<compile_context>
chip_gen: v7x
topology: tpu7x:2x2x1
jax: 0.10.0
libtpu: 0.0.40
codegen_flags: <defaults>
</compile_context>

<pallas_src>
import functools

import jax
import jax.numpy as jnp
from jax import lax
from jax.experimental import pallas as pl
from jax.experimental.pallas import tpu as pltpu

LANE = 128  # pad feature/class dims to the 128-lane vreg width


def _round_up(n, m):
    return (n + m - 1) // m * m


def _pad2(a, rows, cols, dtype=jnp.bfloat16):
    r, c = a.shape
    return jnp.pad(a, ((0, rows - r), (0, cols - c))).astype(dtype)


# ---------------------------------------------------------------------------
# Kernel 1: per-row-tile "dual linear" precompute for one SAGE layer.
#   xn = x @ W_l            (neighbor path, fed to the aggregation kernel)
#   xs = x @ W_r + b        (self path, added in the aggregation epilogue)
# ---------------------------------------------------------------------------
def dual_linear_kernel(x_ref, wl_ref, wr_ref, b_ref, xn_ref, xs_ref):
    x = x_ref[...]
    xn_ref[...] = jnp.dot(x, wl_ref[...],
                          preferred_element_type=jnp.float32).astype(xn_ref.dtype)
    xs = jnp.dot(x, wr_ref[...], preferred_element_type=jnp.float32) + b_ref[...]
    xs_ref[...] = xs.astype(xs_ref.dtype)


# ---------------------------------------------------------------------------
# Kernel 2: streaming mean-aggregation for one SAGE layer.
#   grid = (row tiles, col tiles); col axis is the reduction (last).
#   acc += A_counts[i,k] @ XWl[k]     (f32 VMEM accumulator)
#   at k == last:  h[i] = relu(acc * inv_deg[i] + xs[i])
# ---------------------------------------------------------------------------
def sage_aggregate_kernel(adj_ref, xn_ref, xs_ref, invdeg_ref, out_ref, acc_ref):
    k = pl.program_id(1)

    @pl.when(k == 0)
    def _():
        acc_ref[...] = jnp.zeros_like(acc_ref)

    acc_ref[...] += jnp.dot(adj_ref[...], xn_ref[...],
                            preferred_element_type=jnp.float32)

    @pl.when(k == pl.num_programs(1) - 1)
    def _():
        h = acc_ref[...] * invdeg_ref[...] + xs_ref[...].astype(jnp.float32)
        out_ref[...] = jnp.maximum(h, 0.0).astype(out_ref.dtype)


# ---------------------------------------------------------------------------
# Kernel 3: global_mean_pool + lin1 + relu + (eval dropout) + lin2 + log_softmax.
#   grid = (row tiles,); pooled sums accumulate in a (G, H) f32 VMEM scratch,
#   the dense tail runs once at the last grid step.
# ---------------------------------------------------------------------------
def pool_tail_kernel(num_classes, pool_ref, h_ref, invcnt_ref,
                     w1_ref, b1_ref, w2_ref, b2_ref, out_ref, pooled_ref):
    i = pl.program_id(0)

    @pl.when(i == 0)
    def _():
        pooled_ref[...] = jnp.zeros_like(pooled_ref)

    # global_mean_pool partial: onehot[:, i-tile] @ h[i-tile]  (counts, not means)
    pooled_ref[...] += jnp.dot(pool_ref[...], h_ref[...],
                               preferred_element_type=jnp.float32)

    @pl.when(i == pl.num_programs(0) - 1)
    def _():
        p = pooled_ref[...] * invcnt_ref[...]                       # mean pool
        p = jnp.dot(p.astype(jnp.bfloat16), w1_ref[...],
                    preferred_element_type=jnp.float32) + b1_ref[...]
        p = jnp.maximum(p, 0.0)
        # dropout(p=0.5, training=False) -> identity
        logits = jnp.dot(p.astype(jnp.bfloat16), w2_ref[...],
                         preferred_element_type=jnp.float32) + b2_ref[...]
        # mask the zero-padded class columns out of the softmax
        col = lax.broadcasted_iota(jnp.int32, logits.shape, 1)
        logits = jnp.where(col < num_classes, logits, -1e30)
        m = jnp.max(logits, axis=-1, keepdims=True)
        z = logits - m
        lse = jnp.log(jnp.sum(jnp.exp(z), axis=-1, keepdims=True))
        out_ref[...] = (z - lse).astype(out_ref.dtype)


# ---------------------------------------------------------------------------
# pallas_call wrappers
# ---------------------------------------------------------------------------
def _dual_linear(x_p, wl_p, wr_p, b_p, *, tile):
    Np, Fp = x_p.shape
    Hp = wl_p.shape[1]
    return pl.pallas_call(
        dual_linear_kernel,
        out_shape=(jax.ShapeDtypeStruct((Np, Hp), jnp.bfloat16),
                   jax.ShapeDtypeStruct((Np, Hp), jnp.bfloat16)),
        grid_spec=pltpu.PrefetchScalarGridSpec(
            num_scalar_prefetch=0,
            grid=(Np // tile,),
            in_specs=[
                pl.BlockSpec((tile, Fp), lambda i: (i, 0)),   # x rows
                pl.BlockSpec((Fp, Hp), lambda i: (0, 0)),     # W_l
                pl.BlockSpec((Fp, Hp), lambda i: (0, 0)),     # W_r
                pl.BlockSpec((1, Hp), lambda i: (0, 0)),      # bias (f32)
            ],
            out_specs=[pl.BlockSpec((tile, Hp), lambda i: (i, 0)),
                       pl.BlockSpec((tile, Hp), lambda i: (i, 0))],
        ),
        compiler_params=pltpu.CompilerParams(
            dimension_semantics=("parallel",),
            vmem_limit_bytes=32 * 1024 * 1024),
        cost_estimate=pl.CostEstimate(
            flops=4 * Np * Fp * Hp,
            transcendentals=0,
            bytes_accessed=2 * (Np * Fp + 2 * Fp * Hp + 2 * Np * Hp)),
    )(x_p, wl_p, wr_p, b_p)


def _sage_aggregate(adj_p, xn, xs, invdeg_p, *, tile):
    Np = adj_p.shape[0]
    Hp = xn.shape[1]
    grid = (Np // tile, Np // tile)
    return pl.pallas_call(
        sage_aggregate_kernel,
        out_shape=jax.ShapeDtypeStruct((Np, Hp), jnp.bfloat16),
        grid_spec=pltpu.PrefetchScalarGridSpec(
            num_scalar_prefetch=0,
            grid=grid,
            in_specs=[
                # adjacency counts: the only re-streamed large operand -> 3 buffers
                pl.BlockSpec((tile, tile), lambda i, k: (i, k),
                             pipeline_mode=pl.Buffered(3)),
                pl.BlockSpec((tile, Hp), lambda i, k: (k, 0)),   # neighbor X@W_l
                pl.BlockSpec((tile, Hp), lambda i, k: (i, 0)),   # self X@W_r + b
                pl.BlockSpec((tile, 1), lambda i, k: (i, 0)),    # 1/deg (f32)
            ],
            out_specs=pl.BlockSpec((tile, Hp), lambda i, k: (i, 0)),
            scratch_shapes=[pltpu.VMEM((tile, Hp), jnp.float32)],
        ),
        compiler_params=pltpu.CompilerParams(
            # row axis parallel -> 2-TensorCore sharding on v7x
            dimension_semantics=("parallel", "arbitrary"),
            vmem_limit_bytes=32 * 1024 * 1024),
        cost_estimate=pl.CostEstimate(
            flops=2 * Np * Np * Hp,
            transcendentals=0,
            bytes_accessed=2 * (Np * Np + 3 * Np * Hp) + 4 * Np),
    )(adj_p, xn, xs, invdeg_p)


def _pool_tail(pool_p, h2, invcnt_p, w1_p, b1_p, w2_p, b2_p, num_classes, *, tile):
    Gp, Np = pool_p.shape
    Hp = h2.shape[1]
    Cp = w2_p.shape[1]
    kern = functools.partial(pool_tail_kernel, num_classes)
    return pl.pallas_call(
        kern,
        out_shape=jax.ShapeDtypeStruct((Gp, Cp), jnp.float32),
        grid_spec=pltpu.PrefetchScalarGridSpec(
            num_scalar_prefetch=0,
            grid=(Np // tile,),
            in_specs=[
                pl.BlockSpec((Gp, tile), lambda i: (0, i)),   # one-hot pool cols
                pl.BlockSpec((tile, Hp), lambda i: (i, 0)),   # h2 rows
                pl.BlockSpec((Gp, 1), lambda i: (0, 0)),      # 1/graph-size (f32)
                pl.BlockSpec((Hp, Hp), lambda i: (0, 0)),     # lin1 W
                pl.BlockSpec((1, Hp), lambda i: (0, 0)),      # lin1 b (f32)
                pl.BlockSpec((Hp, Cp), lambda i: (0, 0)),     # lin2 W
                pl.BlockSpec((1, Cp), lambda i: (0, 0)),      # lin2 b (f32)
            ],
            out_specs=pl.BlockSpec((Gp, Cp), lambda i: (0, 0)),
            scratch_shapes=[pltpu.VMEM((Gp, Hp), jnp.float32)],
        ),
        compiler_params=pltpu.CompilerParams(
            # pooled-sum scratch accumulates across row tiles -> must stay serial
            dimension_semantics=("arbitrary",),
            vmem_limit_bytes=32 * 1024 * 1024),
        cost_estimate=pl.CostEstimate(
            flops=2 * Gp * Np * Hp + 2 * Gp * Hp * Hp + 2 * Gp * Hp * Cp,
            transcendentals=Gp * Cp,
            bytes_accessed=2 * (Gp * Np + Np * Hp) + 4 * Gp * Cp),
    )(pool_p, h2, invcnt_p, w1_p, b1_p, w2_p, b2_p)


# ---------------------------------------------------------------------------
# Full forward
# ---------------------------------------------------------------------------
def graphsage_forward(x, adj_counts, inv_deg, pool_onehot, inv_counts, params,
                      *, tile=None):
    """adj_counts: [N,N] neighbor counts; inv_deg: [N] 1/max(deg,1);
    pool_onehot: [G,N] 0/1 graph membership; inv_counts: [G] 1/graph-size."""
    (wl1, bl1, wr1, wl2, bl2, wr2, w1, b1, w2, b2) = params
    N, F = x.shape
    H = wl1.shape[1]
    C = w2.shape[1]
    G = pool_onehot.shape[0]

    if tile is None:
        # 256 fills the 256-wide MXU contraction on v6e/v7x; go to 512 for
        # larger graphs to amortize per-step overhead / hit HBM roofline.
        tile = 512 if _round_up(N, 256) >= 2048 else 256

    Np = _round_up(N, tile)
    Fp = _round_up(F, LANE)
    Hp = _round_up(H, LANE)
    Cp = _round_up(C, LANE)
    Gp = _round_up(G, 8)

    # bf16 MXU operands (all streamed values are exact small integers / 0-1);
    # f32 accumulation and f32 per-row scales inside the kernels.
    x_p = _pad2(x, Np, Fp)
    adj_p = _pad2(adj_counts, Np, Np)
    pool_p = _pad2(pool_onehot, Gp, Np)
    invdeg_p = _pad2(inv_deg.reshape(N, 1), Np, 1, dtype=jnp.float32)
    invcnt_p = _pad2(inv_counts.reshape(G, 1), Gp, 1, dtype=jnp.float32)

    wl1_p = _pad2(wl1, Fp, Hp)
    wr1_p = _pad2(wr1, Fp, Hp)
    b1_p = _pad2(bl1, 1, Hp, dtype=jnp.float32)
    wl2_p = _pad2(wl2, Hp, Hp)
    wr2_p = _pad2(wr2, Hp, Hp)
    b2_p = _pad2(bl2, 1, Hp, dtype=jnp.float32)
    wlin1 = _pad2(w1, Hp, Hp)
    blin1 = _pad2(b1, 1, Hp, dtype=jnp.float32)
    wlin2 = _pad2(w2, Hp, Cp)
    blin2 = _pad2(b2, 1, Cp, dtype=jnp.float32)

    # ---- SAGE layer 1 ----
    xn1, xs1 = _dual_linear(x_p, wl1_p, wr1_p, b1_p, tile=tile)
    h1 = _sage_aggregate(adj_p, xn1, xs1, invdeg_p, tile=tile)

    # ---- SAGE layer 2 ----
    xn2, xs2 = _dual_linear(h1, wl2_p, wr2_p, b2_p, tile=tile)
    h2 = _sage_aggregate(adj_p, xn2, xs2, invdeg_p, tile=tile)

    # ---- global_mean_pool + lin1 + lin2 + log_softmax ----
    out_p = _pool_tail(pool_p, h2, invcnt_p, wlin1, blin1, wlin2, blin2, C,
                       tile=tile)
    return out_p[:G, :C]


def graphsage_reference(x, adj_mean, pool_mean, params):
    (wl1, bl1, wr1, wl2, bl2, wr2, w1, b1, w2, b2) = params
    h = jnp.maximum(adj_mean @ x @ wl1 + bl1 + x @ wr1, 0.0)
    h = jnp.maximum(adj_mean @ h @ wl2 + bl2 + h @ wr2, 0.0)
    p = pool_mean @ h
    p = jnp.maximum(p @ w1 + b1, 0.0)
    logits = p @ w2 + b2
    return jax.nn.log_softmax(logits, axis=-1)


if __name__ == "__main__":
    # nodes, in-feats, hidden, classes, graphs, edges (small, but gives a 2x2
    # aggregation grid at tile=256 so the accumulator/pipeline paths are used)
    N, F_IN, H, C, G, E = 512, 16, 32, 8, 4, 2048

    key = jax.random.PRNGKey(0)
    keys = jax.random.split(key, 16)

    # Node features
    x = jax.random.normal(keys[0], (N, F_IN), dtype=jnp.float32)

    # Deterministic random edge_index -> dense neighbor-count matrix.
    # .add (not .set): PyG's scatter-mean counts duplicate edges with multiplicity.
    src = jax.random.randint(keys[1], (E,), 0, N)
    dst = jax.random.randint(keys[2], (E,), 0, N)
    A = jnp.zeros((N, N), dtype=jnp.float32).at[dst, src].add(1.0)
    deg = jnp.sum(A, axis=1)
    inv_deg = 1.0 / jnp.maximum(deg, 1.0)
    adj_mean = A * inv_deg[:, None]          # reference only

    # batch assignment -> one-hot membership and per-graph 1/count
    batch = jnp.repeat(jnp.arange(G), N // G)
    onehot = (batch[None, :] == jnp.arange(G)[:, None]).astype(jnp.float32)
    counts = jnp.sum(onehot, axis=1)
    inv_counts = 1.0 / jnp.maximum(counts, 1.0)
    pool_mean = onehot * inv_counts[:, None]  # reference only

    # Deterministic parameters (stored transposed so kernels do x @ W).
    def w(k, shape):
        return (0.1 * jax.random.normal(k, shape)).astype(jnp.float32)

    params = (
        w(keys[3], (F_IN, H)),  # conv1 lin_l weight
        w(keys[4], (1, H)),     # conv1 lin_l bias
        w(keys[5], (F_IN, H)),  # conv1 lin_r weight (no bias in PyG)
        w(keys[6], (H, H)),     # conv2 lin_l weight
        w(keys[7], (1, H)),     # conv2 lin_l bias
        w(keys[8], (H, H)),     # conv2 lin_r weight
        w(keys[9], (H, H)),     # lin1 weight
        w(keys[10], (1, H)),    # lin1 bias
        w(keys[11], (H, C)),    # lin2 weight
        w(keys[12], (1, C)),    # lin2 bias
    )

    out = graphsage_forward(x, A, inv_deg, onehot, inv_counts, params)
    out = jax.block_until_ready(out)

    ref = graphsage_reference(x, adj_mean, pool_mean, params)
    assert out.shape == (G, C)
    # bf16 MXU operands (f32 accumulation, f32 per-row scales) vs f32 reference
    assert jnp.allclose(out, ref, atol=5e-2, rtol=5e-2), (
        "kernel/reference mismatch: max abs diff "
        f"{jnp.max(jnp.abs(out - ref))}")

    print("KERNEL_OK")
</pallas_src>

<mosaic_0001>
module attributes {stable_mosaic.version = 11 : i64} {
  func.func @dual_linear_kernel(%arg0: i32, %arg1: memref<256x128xbf16, #tpu.memory_space<vmem>>, %arg2: memref<128x128xbf16, #tpu.memory_space<vmem>>, %arg3: memref<128x128xbf16, #tpu.memory_space<vmem>>, %arg4: memref<1x128xf32, #tpu.memory_space<vmem>>, %arg5: memref<256x128xbf16, #tpu.memory_space<vmem>>, %arg6: memref<256x128xbf16, #tpu.memory_space<vmem>>) attributes {dimension_semantics = [#tpu.dimension_semantics<parallel>], iteration_bounds = array<i64: 2>, scalar_prefetch = 0 : i64, scratch_operands = 0 : i64, tpu.core_type = #tpu.core_type<tc>, window_params = [{transform_indices = @transform_0, window_bounds = array<i64: 256, 128>}, {pipeline_mode = #tpu.pipeline_mode<synchronous>, transform_indices = @transform_1, window_bounds = array<i64: 128, 128>}, {pipeline_mode = #tpu.pipeline_mode<synchronous>, transform_indices = @transform_2, window_bounds = array<i64: 128, 128>}, {pipeline_mode = #tpu.pipeline_mode<synchronous>, transform_indices = @transform_3, window_bounds = array<i64: 1, 128>}, {transform_indices = @transform_4, window_bounds = array<i64: 256, 128>}, {transform_indices = @transform_5, window_bounds = array<i64: 256, 128>}]} {
    %c0 = arith.constant 0 : index
    %c0_0 = arith.constant 0 : index
    %0 = vector.load %arg1[%c0, %c0_0] : memref<256x128xbf16, #tpu.memory_space<vmem>>, vector<256x128xbf16>
    %c0_1 = arith.constant 0 : index
    %c0_2 = arith.constant 0 : index
    %1 = vector.load %arg2[%c0_1, %c0_2] : memref<128x128xbf16, #tpu.memory_space<vmem>>, vector<128x128xbf16>
    %cst = arith.constant dense<0.000000e+00> : vector<256x128xf32>
    %2 = tpu.matmul %0, %1, %cst {dimension_numbers = #tpu.dot_dimension_numbers<[1], [0], [0], [1], [0, 0, 1, 1], [], []>} : vector<256x128xbf16>, vector<128x128xbf16>, vector<256x128xf32> -> vector<256x128xf32>
    %3 = arith.truncf %2 : vector<256x128xf32> to vector<256x128xbf16>
    %c0_3 = arith.constant 0 : index
    %c0_4 = arith.constant 0 : index
    %4 = vector.load %arg5[%c0_3, %c0_4] : memref<256x128xbf16, #tpu.memory_space<vmem>>, vector<256x128xbf16>
    tpu.vector_store %arg5[%c0_3, %c0_4], %3 {strides = array<i32>} : memref<256x128xbf16, #tpu.memory_space<vmem>>, vector<256x128xbf16>,
    %c0_5 = arith.constant 0 : index
    %c0_6 = arith.constant 0 : index
    %5 = vector.load %arg3[%c0_5, %c0_6] : memref<128x128xbf16, #tpu.memory_space<vmem>>, vector<128x128xbf16>
    %cst_7 = arith.constant dense<0.000000e+00> : vector<256x128xf32>
    %6 = tpu.matmul %0, %5, %cst_7 {dimension_numbers = #tpu.dot_dimension_numbers<[1], [0], [0], [1], [0, 0, 1, 1], [], []>} : vector<256x128xbf16>, vector<128x128xbf16>, vector<256x128xf32> -> vector<256x128xf32>
    %c0_8 = arith.constant 0 : index
    %c0_9 = arith.constant 0 : index
    %7 = vector.load %arg4[%c0_8, %c0_9] : memref<1x128xf32, #tpu.memory_space<vmem>>, vector<1x128xf32>
    %8 = vector.broadcast %7 : vector<1x128xf32> to vector<256x128xf32>
    %9 = arith.addf %6, %8 : vector<256x128xf32>
    %10 = arith.truncf %9 : vector<256x128xf32> to vector<256x128xbf16>
    %c0_10 = arith.constant 0 : index
    %c0_11 = arith.constant 0 : index
    %11 = vector.load %arg6[%c0_10, %c0_11] : memref<256x128xbf16, #tpu.memory_space<vmem>>, vector<256x128xbf16>
    tpu.vector_store %arg6[%c0_10, %c0_11], %10 {strides = array<i32>} : memref<256x128xbf16, #tpu.memory_space<vmem>>, vector<256x128xbf16>,
    return
  }
  func.func @transform_0(%arg0: i32) -> (i32, i32) {
    %c0_i32 = arith.constant 0 : i32
    %c0_i32_0 = arith.constant 0 : i32
    return %arg0, %c0_i32 : i32, i32
  }
  func.func @transform_1(%arg0: i32) -> (i32, i32) {
    %c0_i32 = arith.constant 0 : i32
    %c0_i32_0 = arith.constant 0 : i32
    %c0_i32_1 = arith.constant 0 : i32
    return %c0_i32, %c0_i32_0 : i32, i32
  }
  func.func @transform_2(%arg0: i32) -> (i32, i32) {
    %c0_i32 = arith.constant 0 : i32
    %c0_i32_0 = arith.constant 0 : i32
    %c0_i32_1 = arith.constant 0 : i32
    return %c0_i32, %c0_i32_0 : i32, i32
  }
  func.func @transform_3(%arg0: i32) -> (i32, i32) {
    %c0_i32 = arith.constant 0 : i32
    %c0_i32_0 = arith.constant 0 : i32
    %c0_i32_1 = arith.constant 0 : i32
    return %c0_i32, %c0_i32_0 : i32, i32
  }
  func.func @transform_4(%arg0: i32) -> (i32, i32) {
    %c0_i32 = arith.constant 0 : i32
    %c0_i32_0 = arith.constant 0 : i32
    return %arg0, %c0_i32 : i32, i32
  }
  func.func @transform_5(%arg0: i32) -> (i32, i32) {
    %c0_i32 = arith.constant 0 : i32
    %c0_i32_0 = arith.constant 0 : i32
    return %arg0, %c0_i32 : i32, i32
  }
}

</mosaic_0001>

<bundles_post_ra>
// kernel: tpu_custom_call.1
= control target key start
LH: loop header
LB: loop body
LE: loop exit
PB: predicated region body
PF: predicated region fallthrough
CT: control target
= control target key end

     0   :  { %11 = vsyncpa [#allocation3], 0  ;;  %s2586_s0 = inlined_call_operand.hbm [shape: bf16[512,128], index: 0, kind: input, shape index: {}]   ;;  %s2587_s1 = inlined_call_operand.hbm [shape: bf16[128,128], index: 1, kind: input, shape index: {}]   ;;  %s2588_s2 = inlined_call_operand.hbm [shape: bf16[128,128], index: 2, kind: input, shape index: {}]   ;;  %s2589_s3 = inlined_call_operand.vmem [shape: f32[1,128], index: 3, kind: input, shape index: {}]   ;;  %s2590_s4 = inlined_call_operand.hbm [shape: bf16[512,128], index: 4, kind: output, shape index: {0}]   ;;  %s2591_s5 = inlined_call_operand.hbm [shape: bf16[512,128], index: 5, kind: output, shape index: {1}]  }
   0x1   :  { %13 = vsyncpa [#allocation3 + $0x1], 0 }
   0x2   :  { %14 = vsyncpa [#allocation6], 0 }
   0x3   :  { %15 = vsyncpa [#allocation4], 0 }
   0x4   :  { %17 = vsyncpa [#allocation4 + $0x1], 0 }
   0x5   :  { %18 = vsyncpa [#allocation10], 0 }
   0x6   :  { %20 = vsyncpa [#allocation10 + $0x1], 0  ;;  %s2208_s18 = smov 0   ;;  %s2210_s19 = smov 0  }
   0x7   :  { %s2212_s20 = smov 0   ;;  %s2214_s21 = smov 0  }
   0x8 LB: > { %s2229_s22 = sadd.s32 4294967295, %s2167_s21   ;;  %s1351_s23 = sadd.s32 4294967294, %s2167_s21   ;;  %s2167_s21 = sphi %s2214_s21, %s2611_s21   ;;  %s2163_s20 = sphi %s2212_s20, %s2610_s20   ;;  %s2159_s19 = sphi %s2210_s19, %s2609_s19   ;;  %s2155_s18 = sphi %s2208_s18, %s2608_s18  }
   0x9   : > { %p46_p0 = scmp.ne.s32.totalorder %s2159_s19, %s2155_s18  ;;  %p2592_p1 = scmp.eq.s32.totalorder %s2229_s22, 0 }
   0xa   : > { %p139_p3 = scmp.eq.s32.totalorder %s1351_s23, 1  ;;  %p1352_p5 = scmp.ge.s32.totalorder %s2167_s21, 1 }
   0xb   : > { %p2238_p4 = por %p2592_p1, %p46_p0  ;;  %p172_p7 = scmp.lt.s32.totalorder %s2167_s21, 3 }
   0xc   : > { %p2243_p6 = por %p139_p3, %p46_p0  ;;  %s2169_s27 = smov [#allocation5]  }
   0xd   : > { %s2595_s24 = scalar_select %p2238_p4, 1, 0 }
   0xe   : > { %s2596_s25 = scalar_select %p2243_p6, 1, 0 }
   0xf   : > { %p2248_p8 = pnand %p1352_p5, %p172_p7  ;;  %s184_s28 = sshll.u32 %s2169_s27, 4  ;;  %s2252_s28 = int_to_ptr.vmem [resolvable:$true] %s184_s28 }
  0x10   : > { %s2170_s30 = smov [#allocation7]   ;;  %s1979_s9 = scalar_lea.hbm %s2587_s1, 1024 }
  0x11   : > { %p1885_p9 = pneg %p2248_p8  ;;  %s197_s6 = sshll.u32 %s2170_s30, 4  ;;  %s2263_s6 = int_to_ptr.vmem [resolvable:$true] %s197_s6 }
  0x12   : > { %p1980_p12 = scmp.ne.s32.totalorder %s2587_s1, %s1979_s9  ;;  %p1986_p5 = scmp.lt.u32.totalorder %s1979_s9, %s2587_s1 }
  0x13   : > { %p2259_p11 = pnand %p1885_p9, %p2592_p1 }
  0x15   : > { %p1981_p13 = pneg %p2259_p11 }
  0x17   : > { %p1982_p0 = pnand %p1981_p13, %p1980_p12 }
  0x19   : > { %p1983_p3 = pneg %p1982_p0 }
  0x1b   : > { %p1988_p7 = pnand %p1986_p5, %p1983_p3 }
  0x1d   : > { %1991 = shalt.err (!%p1988_p7)
}
  0x1e   : > { %s1992_s14 = scalar_lea.vmem %s2252_s28, 1024  ;;  %p2000_p2 = scmp.lt.s32.totalorder %s2252_s28, %s2252_s28 }
  0x1f   : > { %p1993_p9 = scmp.ne.s32.totalorder %s2252_s28, %s1992_s14  ;;  %p2001_p12 = scmp.lt.s32.totalorder %s1992_s14, %s1992_s14 }
  0x21   : > { %p1995_p10 = pnand %p1993_p9, %p1981_p13  ;;  %p2002_p0 = por %p2001_p12, %p2000_p2 }
  0x23   : > { %p1996_p1 = pneg %p1995_p10 }
  0x25   : > { %p2003_p6 = pnand %p2002_p0, %p1996_p1 }
  0x27   : > { %2006 = shalt.err (!%p2003_p6)
}
  0x28   : > { %s2171_s15 = smov 64   ;;  %s2172_s16 = smov 4  }
  0x29   : > { %1888 = dma.hbm_to_vmem [thread:$0]  (!%p2259_p11), %s2587_s1, 1024, %s2252_s28, [#allocation6], %s2171_s15, %s2171_s15, %s2172_s16  }
  0x2a   : > { %s2007_s7 = scalar_lea.hbm %s2588_s2, 1024 }
  0x2b   : > { %p2008_p1 = scmp.ne.s32.totalorder %s2588_s2, %s2007_s7  ;;  %p2014_p10 = scmp.lt.u32.totalorder %s2007_s7, %s2588_s2 }
  0x2d   : > { %p2010_p2 = pnand %p2008_p1, %p1981_p13 }
  0x2f   : > { %p2011_p6 = pneg %p2010_p2 }
  0x31   : > { %p2016_p3 = pnand %p2014_p10, %p2011_p6 }
  0x33   : > { %2019 = shalt.err (!%p2016_p3)
}
  0x34   : > { %s2020_s28 = scalar_lea.vmem %s2263_s6, 1024  ;;  %p2028_p12 = scmp.lt.s32.totalorder %s2263_s6, %s2263_s6 }
  0x35   : > { %p2021_p5 = scmp.ne.s32.totalorder %s2263_s6, %s2020_s28  ;;  %p2029_p0 = scmp.lt.s32.totalorder %s2020_s28, %s2020_s28 }
  0x37   : > { %p2023_p7 = pnand %p2021_p5, %p1981_p13  ;;  %p2030_p1 = por %p2029_p0, %p2028_p12 }
  0x39   : > { %p2024_p9 = pneg %p2023_p7 }
  0x3b   : > { %p2031_p2 = pnand %p2030_p1, %p2024_p9 }
  0x3d   : > { %2034 = shalt.err (!%p2031_p2)
}
  0x3e   : > { %1891 = dma.hbm_to_vmem [thread:$0]  (!%p2259_p11), %s2588_s2, 1024, %s2263_s6, [#allocation6], %s2171_s15, %s2171_s15, %s2172_s16  }
  0x3f   : > { %s2324_s29 = sadd.s32 1, %s2167_s21   ;;  %s33_s14 = sadd.s32 1, %s2163_s20 }
  0x40   : > { %s30_s17 = ssub.s32 %s2167_s21, %s2324_s29  ;;  %p40_p13 = scmp.ne.s32.totalorder %s2163_s20, %s2159_s19 }
  0x41   : > { %p31_p6 = scmp.eq.s32.totalorder %s30_s17, 0  ;;  %p41_p10 = scmp.eq.s32.totalorder %s2167_s21, 0 }
  0x42   : > { %p2599_p3 = scmp.eq.s32.totalorder %s2229_s22, 1  ;;  %p1905_p7 = scmp.lt.s32.totalorder %s2167_s21, 2 }
  0x43   : > { %s2340_s27 = scalar_select %p31_p6, %s2163_s20, %s33_s14  }
  0x44   : > { %p2334_p5 = por %p2599_p3, %p40_p13  ;;  %p42_p9 = por %p41_p10, %p40_p13 }
  0x45   : > { %s214_s30 = sand.u32 1, %s2163_s20   ;;  %s1470_s6 = sshll.u32 %s2167_s21, 11 }
  0x46   : > { %s2600_s23 = scalar_select %p2334_p5, 1, 0 }
  0x47   : > { %s1356_s7 = sshll.u32 %s214_s30, 7  ;;  %s2347_s10 = scalar_lea.hbm %s2586_s0, %s1470_s6 }
  0x48   : > { %s218_s11 = scalar_lea.vmem [#allocation2], %s1356_s7  ;;  %p2351_p11 = pnand %p1905_p7, %p42_p9 }
  0x49   : > { %s225_s28 = sshll.u32 %s218_s11, 4  ;;  %s2355_s13 = scalar_lea.sflag [#allocation3], %s214_s30  ;;  %s2349_s28 = int_to_ptr.vmem [resolvable:$true] %s225_s28 }
  0x4a   : > { %s2035_s14 = scalar_lea.hbm %s2347_s10, 2048  ;;  %p2037_p0 = pneg %p2351_p11 }
  0x4b   : > { %p2036_p12 = scmp.ne.s32.totalorder %s2347_s10, %s2035_s14  ;;  %s2040_s6 = scalar_lea.hbm %s2586_s0, 4096 }
  0x4c   : > { %p2041_p13 = scmp.lt.u32.totalorder %s2347_s10, %s2586_s0  ;;  %p2042_p6 = scmp.lt.u32.totalorder %s2040_s6, %s2035_s14 }
  0x4d   : > { %p2038_p1 = pnand %p2037_p0, %p2036_p12  ;;  %p2044_p3 = scmp.lt.u32.totalorder %s2035_s14, %s2347_s10 }
  0x4e   : > { %p2043_p10 = por %p2042_p6, %p2041_p13 }
  0x4f   : > { %p2039_p2 = pneg %p2038_p1 }
  0x50   : > { %p2045_p7 = por %p2044_p3, %p2043_p10 }
  0x52   : > { %p2046_p9 = pnand %p2045_p7, %p2039_p2 }
  0x54   : > { %2049 = shalt.err (!%p2046_p9)
}
  0x55   : > { %s2050_s30 = scalar_lea.vmem %s2349_s28, 2048  ;;  %s2173_s11 = smov [#allocation2]  }
  0x56   : > { %p2051_p12 = scmp.ne.s32.totalorder %s2349_s28, %s2050_s30  ;;  %s2055_s17 = sshll.u32 %s2173_s11, 4  ;;  %s2056_s17 = int_to_ptr.vmem [resolvable:$false] %s2055_s17 }
  0x57   : > { %s2057_s7 = scalar_lea.vmem %s2056_s17, 4096  ;;  %p2058_p4 = scmp.lt.s32.totalorder %s2349_s28, %s2056_s17 }
  0x58   : > { %p2053_p1 = pnand %p2051_p12, %p2037_p0  ;;  %p2059_p13 = scmp.lt.s32.totalorder %s2057_s7, %s2050_s30 }
  0x5a   : > { %p2054_p5 = pneg %p2053_p1  ;;  %p2060_p6 = por %p2059_p13, %p2058_p4 }
  0x5c   : > { %p2061_p10 = pnand %p2060_p6, %p2054_p5 }
  0x5e   : > { %2064 = shalt.err (!%p2061_p10)
}
  0x5f   : > { %1895 = dma.hbm_to_vmem [thread:$0]  (!%p2351_p11), %s2347_s10, 2048, %s2349_s28, %s2355_s13, %s2171_s15, %s2171_s15, %s2172_s16  }
  0x60   : > { %237 = sbr.rel (%p2248_p8) target bundleno = 452 (0x1c4), region = 36  ;;  %s2389_s14 = sand.u32 (!%p2248_p8), 1, %s2159_s19  }
  0x61   : > { %s2392_s6 = sshll.u32 (!%p2248_p8), %s2389_s14, 7  ;;  %s240_s12 = scalar_lea.sflag (!%p2248_p8), [#allocation3], %s2389_s14 }
  0x62   : > { %s2396_s8 = scalar_lea.vmem (!%p2248_p8), [#allocation2], %s2392_s6  ;;  %p2602_p4 = scmp.ne.s32.totalorder (!%p2248_p8), %s2595_s24, 0 }
  0x67   : > { %2138 = dma.done.wait (%p2602_p4), %s240_s12, 2048  }
  0x68   : > { %2140 = vsyncadd (%p2602_p4), %s240_s12, 4294965248  ;;  %p2603_p5 = scmp.eq.s32.totalorder %s2229_s22, 0 }
  0x6a   : > { %2142 = dma.done.wait (%p2603_p5), [#allocation6], 2048   ;;  %p2604_p8 = pmov %p2603_p5 }
  0x6b   : > { %v1947_v0 = vld [vmem:[#allocation5] sm:$0xff]   ;;  %v1949_v2 = vld [vmem:[#allocation5 + $0x8] sm:$0xff]   ;;  %v1951_v4 = vld [vmem:[#allocation5 + $0x10] sm:$0xff]   ;;  %s2431_s15 = scalar_lea.vmem [#allocation8], %s2392_s6  ;;  %s2437_s16 = scalar_lea.vmem [#allocation9], %s2392_s6 }
  0x6c   : > { %2144 = vsyncadd (%p2604_p8), [#allocation6], 4294965248  ;;  %v1948_v1 = vld [vmem:[#allocation7] sm:$0xff]   ;;  %1775 = vmatprep.subr.bf16.mxu0 %v1947_v0  ;;  %v1950_v3 = vld [vmem:[#allocation7 + $0x8] sm:$0xff]   ;;  %s1535_s10 = sshll.u32 %s2229_s22, 11  ;;  %s1211_s28 = sshll.u32 %s2431_s15, 4  ;;  %s2496_s28 = int_to_ptr.vmem [resolvable:$true] %s1211_s28 }
  0x6d   : > { %1823 = vmatprep.subr.bf16.mxu1 %v1948_v1  ;;  %1776 = vmatpush3.bf16.msra.mxu0 %v1947_v0  ;;  %v1952_v5 = vld [vmem:[#allocation7 + $0x10] sm:$0xff]   ;;  %v1953_v6 = vld [vmem:[#allocation5 + $0x18] sm:$0xff]   ;;  %v1955_v8 = vld [vmem:[#allocation5 + $0x20] sm:$0xff]   ;;  %s2494_s30 = scalar_lea.hbm %s2590_s4, %s1535_s10  ;;  %s1227_s22 = sshll.u32 %s2437_s16, 4  ;;  %s2510_s22 = int_to_ptr.vmem [resolvable:$true] %s1227_s22 }
  0x6e   : > { %1824 = vmatpush3.bf16.msra.mxu1 %v1948_v1  ;;  %1777 = vmatprep.subr.bf16.mxu0 %v1949_v2  ;;  %v1954_v7 = vld [vmem:[#allocation7 + $0x18] sm:$0xff]   ;;  %v1956_v9 = vld [vmem:[#allocation7 + $0x20] sm:$0xff]   ;;  %v1957_v10 = vld [vmem:[#allocation5 + $0x28] sm:$0xff]   ;;  %s2508_s7 = scalar_lea.hbm %s2591_s5, %s1535_s10  ;;  %s1193_s6 = scalar_lea.sflag [#allocation4], %s2389_s14 }
  0x6f   : > { %1825 = vmatprep.subr.bf16.mxu1 %v1950_v3  ;;  %v1963_v11 = vld [vmem:[%s2396_s8] sm:$0xff]   ;;  %v1958_v12 = vld [vmem:[#allocation7 + $0x28] sm:$0xff]   ;;  %v1959_v13 = vld [vmem:[#allocation5 + $0x30] sm:$0xff]   ;;  %s2065_s12 = scalar_lea.vmem %s2496_s28, 2048  ;;  %p2605_p0 = scmp.ne.s32.totalorder %s2600_s23, 0 }
  0x70   : > { %1791 = vmatprep.mubr.bf16.mxu0 %v1963_v11  ;;  %1839 = vmatprep.mubr.bf16.mxu1 %v1963_v11  ;;  %v1960_v14 = vld [vmem:[#allocation7 + $0x30] sm:$0xff]   ;;  %v1961_v15 = vld [vmem:[#allocation5 + $0x38] sm:$0xff]   ;;  %v1964_v17 = vld [vmem:[%s2396_s8 + $0x8] sm:$0xff]   ;;  %p2066_p11 = scmp.ne.s32.totalorder %s2496_s28, %s2065_s12 }
  0x71   : > { %1778 = vmatpush3.bf16.msra.mxu0 %v1949_v2  ;;  %v1962_v16 = vld [vmem:[#allocation7 + $0x38] sm:$0xff]   ;;  %v1965_v18 = vld [vmem:[%s2396_s8 + $0x10] sm:$0xff]   ;;  %v1967_v20 = vld [vmem:[%s2396_s8 + $0x20] sm:$0xff]  }
  0x72   : > { %1826 = vmatpush3.bf16.msra.mxu1 %v1950_v3  ;;  %1779 = vmatprep.subr.bf16.mxu0 %v1951_v4  ;;  %v1966_v19 = vld [vmem:[%s2396_s8 + $0x18] sm:$0xff]   ;;  %v1968_v21 = vld [vmem:[%s2396_s8 + $0x28] sm:$0xff]   ;;  %v1969_v22 = vld [vmem:[%s2396_s8 + $0x30] sm:$0xff]   ;;  %p2067_p2 = pnand %p2066_p11, %p2605_p0 }
  0x73   : > { %1827 = vmatprep.subr.bf16.mxu1 %v1952_v5  ;;  %v1970_v23 = vld [vmem:[%s2396_s8 + $0x38] sm:$0xff]   ;;  %v1971_v24 = vld [vmem:[%s2396_s8 + $0x40] sm:$0xff]   ;;  %v1972_v25 = vld [vmem:[%s2396_s8 + $0x48] sm:$0xff]  }
  0x74   : > { %v1973_v26 = vld [vmem:[%s2396_s8 + $0x50] sm:$0xff]   ;;  %v1974_v27 = vld [vmem:[%s2396_s8 + $0x58] sm:$0xff]   ;;  %v1975_v28 = vld [vmem:[%s2396_s8 + $0x60] sm:$0xff]   ;;  %p2068_p3 = pneg %p2067_p2 }
  0x75   : > { %1780 = vmatpush3.bf16.msra.mxu0 %v1951_v4  ;;  %v1976_v29 = vld [vmem:[%s2396_s8 + $0x68] sm:$0xff]   ;;  %v1977_v30 = vld [vmem:[%s2396_s8 + $0x70] sm:$0xff]   ;;  %v1978_v31 = vld [vmem:[%s2396_s8 + $0x78] sm:$0xff]   ;;  %s2174_s8 = smov [#allocation8]  }
  0x76   : > { %1828 = vmatpush3.bf16.msra.mxu1 %v1952_v5  ;;  %1781 = vmatprep.subr.bf16.mxu0 %v1953_v6  ;;  %v2425_v34 = vld [vmem:[%s2589_s3] ss:$0 sm:$0xff]  ;;  %s2069_s24 = sshll.u32 %s2174_s8, 4  ;;  %s2070_s24 = int_to_ptr.vmem [resolvable:$false] %s2069_s24 }
  0x77   : > { %1829 = vmatprep.subr.bf16.mxu1 %v1954_v7  ;;  %s2071_s26 = scalar_lea.vmem %s2070_s24, 4096  ;;  %p2072_p7 = scmp.lt.s32.totalorder %s2496_s28, %s2070_s24 }
  0x78   : > { %p2073_p9 = scmp.lt.s32.totalorder %s2071_s26, %s2065_s12 }
  0x79   : > { %1782 = vmatpush3.bf16.msra.mxu0 %v1953_v6 }
  0x7a   : > { %1830 = vmatpush3.bf16.msra.mxu1 %v1954_v7  ;;  %1783 = vmatprep.subr.bf16.mxu0 %v1955_v8  ;;  %p2074_p12 = por %p2073_p9, %p2072_p7 }
  0x7b   : > { %1831 = vmatprep.subr.bf16.mxu1 %v1956_v9 }
  0x7c   : > { %p2075_p1 = pnand %p2074_p12, %p2068_p3 }
  0x7d   : > { %1784 = vmatpush3.bf16.msra.mxu0 %v1955_v8 }
  0x7e   : > { %1832 = vmatpush3.bf16.msra.mxu1 %v1956_v9  ;;  %1785 = vmatprep.subr.bf16.mxu0 %v1957_v10 }
  0x7f   : > { %1833 = vmatprep.subr.bf16.mxu1 %v1958_v12 }
  0x81   : > { %1786 = vmatpush3.bf16.msra.mxu0 %v1957_v10 }
  0x82   : > { %1834 = vmatpush3.bf16.msra.mxu1 %v1958_v12  ;;  %1787 = vmatprep.subr.bf16.mxu0 %v1959_v13 }
  0x83   : > { %1835 = vmatprep.subr.bf16.mxu1 %v1960_v14 }
  0x85   : > { %1788 = vmatpush3.bf16.msra.mxu0 %v1959_v13 }
  0x86   : > { %1836 = vmatpush3.bf16.msra.mxu1 %v1960_v14  ;;  %1789 = vmatprep.subr.bf16.mxu0 %v1961_v15 }
  0x87   : > { %1837 = vmatprep.subr.bf16.mxu1 %v1962_v16 }
  0x89   : > { %1790 = vmatpush3.bf16.msra.mxu0 %v1961_v15 }
  0x8a   : > { %1838 = vmatpush3.bf16.msra.mxu1 %v1962_v16 }
  0x8c   : > { %1792 = vmatmul.mubr.bf16.vlgmr.msra.gmra.mrb[0].mxu0 %v1964_v17 }
  0x8d   : > { %1840 = vmatmul.mubr.bf16.vlgmr.msra.gmra.mrb[0].mxu1 %v1964_v17  ;;  %1795 = vmatprep.mubr.bf16.mxu0 %v1965_v18 }
  0x8e   : > { %1843 = vmatprep.mubr.bf16.mxu1 %v1965_v18 }
  0x94   : > { %1796 = vmatmul.mubr.bf16.gmra.mrb[4].mxu0 %v1966_v19 }
  0x95   : > { %1844 = vmatmul.mubr.bf16.gmra.mrb[4].mxu1 %v1966_v19  ;;  %1799 = vmatprep.mubr.bf16.mxu0 %v1967_v20 }
  0x96   : > { %1847 = vmatprep.mubr.bf16.mxu1 %v1967_v20 }
  0x9c   : > { %1800 = vmatmul.mubr.bf16.gmra.mrb[8].mxu0 %v1968_v21 }
  0x9d   : > { %1848 = vmatmul.mubr.bf16.gmra.mrb[8].mxu1 %v1968_v21  ;;  %1803 = vmatprep.mubr.bf16.mxu0 %v1969_v22 }
  0x9e   : > { %1851 = vmatprep.mubr.bf16.mxu1 %v1969_v22 }
  0xa4   : > { %1804 = vmatmul.mubr.bf16.gmra.mrb[12].mxu0 %v1970_v23 }
  0xa5   : > { %1852 = vmatmul.mubr.bf16.gmra.mrb[12].mxu1 %v1970_v23  ;;  %1807 = vmatprep.mubr.bf16.mxu0 %v1971_v24 }
  0xa6   : > { %1855 = vmatprep.mubr.bf16.mxu1 %v1971_v24 }
  0xac   : > { %1808 = vmatmul.mubr.bf16.gmra.mrb[16].mxu0 %v1972_v25 }
  0xad   : > { %1856 = vmatmul.mubr.bf16.gmra.mrb[16].mxu1 %v1972_v25  ;;  %1811 = vmatprep.mubr.bf16.mxu0 %v1973_v26 }
  0xae   : > { %1859 = vmatprep.mubr.bf16.mxu1 %v1973_v26 }
  0xb4   : > { %1812 = vmatmul.mubr.bf16.gmra.mrb[20].mxu0 %v1974_v27 }
  0xb5   : > { %1860 = vmatmul.mubr.bf16.gmra.mrb[20].mxu1 %v1974_v27  ;;  %1815 = vmatprep.mubr.bf16.mxu0 %v1975_v28 }
  0xb6   : > { %1863 = vmatprep.mubr.bf16.mxu1 %v1975_v28 }
  0xbc   : > { %1816 = vmatmul.mubr.bf16.gmra.mrb[24].mxu0 %v1976_v29 }
  0xbd   : > { %1864 = vmatmul.mubr.bf16.gmra.mrb[24].mxu1 %v1976_v29  ;;  %1819 = vmatprep.mubr.bf16.mxu0 %v1977_v30 }
  0xbe   : > { %1867 = vmatprep.mubr.bf16.mxu1 %v1977_v30 }
  0xc4   : > { %1820 = vmatmul.mubr.bf16.gmra.mrb[28].mxu0 %v1978_v31 }
  0xc5   : > { %1868 = vmatmul.mubr.bf16.gmra.mrb[28].mxu1 %v1978_v31 }
 0x15f   : > { %v1793_v32 = vpop.f32.mrb[0].mxu0 }
 0x160   : > { %v1841_v33 = vpop.f32.mrb[0].mxu1  ;;  %v513_v35 = vpop.f32.mrb[1].mxu0 }
 0x161   : > { %v905_v36 = vpop.f32.mrb[1].mxu1  ;;  %v1794_v37 = vpop.f32.mrb[2].mxu0  ;;  %v914_v41 = vadd.f32 %v1841_v33, %v2425_v34 }
 0x162   : > { %v1545_v38 = vpack.c.bf16 %v1794_v37, %v1793_v32  ;;  %v1842_v39 = vpop.f32.mrb[2].mxu1  ;;  %v516_v40 = vpop.f32.mrb[3].mxu0  ;;  %v906_v45 = vadd.f32 %v2425_v34, %v905_v36 }
 0x163   : > { %v917_v42 = vadd.f32 %v1842_v39, %v2425_v34  ;;  %v1540_v43 = vpack.c.bf16 %v516_v40, %v513_v35  ;;  %v908_v44 = vpop.f32.mrb[3].mxu1 }
 0x164   : > { %1697 = vst [vmem:[%s2431_s15 + $0x8] sm:$0xff] %v1545_v38   ;;  %v909_v46 = vadd.f32 %v2425_v34, %v908_v44 }
 0x165   : > { %v1625_v47 = vpack.c.bf16 %v917_v42, %v914_v41  ;;  %1541 = vst [vmem:[%s2431_s15] sm:$0xff] %v1540_v43  }
 0x166   : > { %v1620_v48 = vpack.c.bf16 %v909_v46, %v906_v45 }
 0x167   : > { %1712 = vst [vmem:[%s2437_s16 + $0x8] sm:$0xff] %v1625_v47   ;;  %v1797_v49 = vpop.f32.mrb[4].mxu0 }
 0x168   : > { %1621 = vst [vmem:[%s2437_s16] sm:$0xff] %v1620_v48   ;;  %v1845_v50 = vpop.f32.mrb[4].mxu1  ;;  %v529_v51 = vpop.f32.mrb[5].mxu0 }
 0x169   : > { %v921_v52 = vpop.f32.mrb[5].mxu1  ;;  %v1798_v53 = vpop.f32.mrb[6].mxu0  ;;  %v930_v57 = vadd.f32 %v1845_v50, %v2425_v34 }
 0x16a   : > { %v1555_v54 = vpack.c.bf16 %v1798_v53, %v1797_v49  ;;  %v1846_v55 = vpop.f32.mrb[6].mxu1  ;;  %v532_v56 = vpop.f32.mrb[7].mxu0  ;;  %v922_v61 = vadd.f32 %v2425_v34, %v921_v52 }
 0x16b   : > { %v933_v58 = vadd.f32 %v1846_v55, %v2425_v34  ;;  %v1550_v59 = vpack.c.bf16 %v532_v56, %v529_v51  ;;  %v924_v60 = vpop.f32.mrb[7].mxu1 }
 0x16c   : > { %1699 = vst [vmem:[%s2431_s15 + $0x18] sm:$0xff] %v1555_v54   ;;  %v925_v62 = vadd.f32 %v2425_v34, %v924_v60 }
 0x16d   : > { %v1635_v63 = vpack.c.bf16 %v933_v58, %v930_v57  ;;  %1698 = vst [vmem:[%s2431_s15 + $0x10] sm:$0xff] %v1550_v59  }
 0x16e   : > { %v1630_v0 = vpack.c.bf16 %v925_v62, %v922_v61 }
 0x16f   : > { %1714 = vst [vmem:[%s2437_s16 + $0x18] sm:$0xff] %v1635_v63   ;;  %v1801_v1 = vpop.f32.mrb[8].mxu0 }
 0x170   : > { %1713 = vst [vmem:[%s2437_s16 + $0x10] sm:$0xff] %v1630_v0   ;;  %v1849_v2 = vpop.f32.mrb[8].mxu1  ;;  %v545_v3 = vpop.f32.mrb[9].mxu0 }
 0x171   : > { %v937_v4 = vpop.f32.mrb[9].mxu1  ;;  %v1802_v5 = vpop.f32.mrb[10].mxu0  ;;  %v946_v9 = vadd.f32 %v1849_v2, %v2425_v34 }
 0x172   : > { %v1565_v6 = vpack.c.bf16 %v1802_v5, %v1801_v1  ;;  %v1850_v7 = vpop.f32.mrb[10].mxu1  ;;  %v548_v8 = vpop.f32.mrb[11].mxu0  ;;  %v938_v13 = vadd.f32 %v2425_v34, %v937_v4 }
 0x173   : > { %v949_v10 = vadd.f32 %v1850_v7, %v2425_v34  ;;  %v1560_v11 = vpack.c.bf16 %v548_v8, %v545_v3  ;;  %v940_v12 = vpop.f32.mrb[11].mxu1 }
 0x174   : > { %1701 = vst [vmem:[%s2431_s15 + $0x28] sm:$0xff] %v1565_v6   ;;  %v941_v14 = vadd.f32 %v2425_v34, %v940_v12 }
 0x175   : > { %v1645_v15 = vpack.c.bf16 %v949_v10, %v946_v9  ;;  %1700 = vst [vmem:[%s2431_s15 + $0x20] sm:$0xff] %v1560_v11  }
 0x176   : > { %v1640_v16 = vpack.c.bf16 %v941_v14, %v938_v13 }
 0x177   : > { %1716 = vst [vmem:[%s2437_s16 + $0x28] sm:$0xff] %v1645_v15   ;;  %v1805_v17 = vpop.f32.mrb[12].mxu0 }
 0x178   : > { %1715 = vst [vmem:[%s2437_s16 + $0x20] sm:$0xff] %v1640_v16   ;;  %v1853_v18 = vpop.f32.mrb[12].mxu1  ;;  %v561_v19 = vpop.f32.mrb[13].mxu0 }
 0x179   : > { %v953_v20 = vpop.f32.mrb[13].mxu1  ;;  %v1806_v21 = vpop.f32.mrb[14].mxu0  ;;  %v962_v25 = vadd.f32 %v1853_v18, %v2425_v34 }
 0x17a   : > { %v1575_v22 = vpack.c.bf16 %v1806_v21, %v1805_v17  ;;  %v1854_v23 = vpop.f32.mrb[14].mxu1  ;;  %v564_v24 = vpop.f32.mrb[15].mxu0  ;;  %v954_v29 = vadd.f32 %v2425_v34, %v953_v20 }
 0x17b   : > { %v965_v26 = vadd.f32 %v1854_v23, %v2425_v34  ;;  %v1570_v27 = vpack.c.bf16 %v564_v24, %v561_v19  ;;  %v956_v28 = vpop.f32.mrb[15].mxu1 }
 0x17c   : > { %1703 = vst [vmem:[%s2431_s15 + $0x38] sm:$0xff] %v1575_v22   ;;  %v957_v30 = vadd.f32 %v2425_v34, %v956_v28 }
 0x17d   : > { %v1655_v31 = vpack.c.bf16 %v965_v26, %v962_v25  ;;  %1702 = vst [vmem:[%s2431_s15 + $0x30] sm:$0xff] %v1570_v27  }
 0x17e   : > { %v1650_v32 = vpack.c.bf16 %v957_v30, %v954_v29 }
 0x17f   : > { %1718 = vst [vmem:[%s2437_s16 + $0x38] sm:$0xff] %v1655_v31   ;;  %v1809_v33 = vpop.f32.mrb[16].mxu0 }
 0x180   : > { %1717 = vst [vmem:[%s2437_s16 + $0x30] sm:$0xff] %v1650_v32   ;;  %v1857_v35 = vpop.f32.mrb[16].mxu1  ;;  %v577_v36 = vpop.f32.mrb[17].mxu0 }
 0x181   : > { %v969_v37 = vpop.f32.mrb[17].mxu1  ;;  %v1810_v38 = vpop.f32.mrb[18].mxu0  ;;  %v978_v42 = vadd.f32 %v1857_v35, %v2425_v34 }
 0x182   : > { %v1585_v39 = vpack.c.bf16 %v1810_v38, %v1809_v33  ;;  %v1858_v40 = vpop.f32.mrb[18].mxu1  ;;  %v580_v41 = vpop.f32.mrb[19].mxu0  ;;  %v970_v46 = vadd.f32 %v2425_v34, %v969_v37 }
 0x183   : > { %v981_v43 = vadd.f32 %v1858_v40, %v2425_v34  ;;  %v1580_v44 = vpack.c.bf16 %v580_v41, %v577_v36  ;;  %v972_v45 = vpop.f32.mrb[19].mxu1 }
 0x184   : > { %1705 = vst [vmem:[%s2431_s15 + $0x48] sm:$0xff] %v1585_v39   ;;  %v973_v47 = vadd.f32 %v2425_v34, %v972_v45 }
 0x185   : > { %v1665_v48 = vpack.c.bf16 %v981_v43, %v978_v42  ;;  %1704 = vst [vmem:[%s2431_s15 + $0x40] sm:$0xff] %v1580_v44  }
 0x186   : > { %v1660_v49 = vpack.c.bf16 %v973_v47, %v970_v46 }
 0x187   : > { %1720 = vst [vmem:[%s2437_s16 + $0x48] sm:$0xff] %v1665_v48   ;;  %v1813_v50 = vpop.f32.mrb[20].mxu0 }
 0x188   : > { %1719 = vst [vmem:[%s2437_s16 + $0x40] sm:$0xff] %v1660_v49   ;;  %v1861_v51 = vpop.f32.mrb[20].mxu1  ;;  %v593_v52 = vpop.f32.mrb[21].mxu0 }
 0x189   : > { %v985_v53 = vpop.f32.mrb[21].mxu1  ;;  %v1814_v54 = vpop.f32.mrb[22].mxu0  ;;  %v994_v58 = vadd.f32 %v1861_v51, %v2425_v34 }
 0x18a   : > { %v1595_v55 = vpack.c.bf16 %v1814_v54, %v1813_v50  ;;  %v1862_v56 = vpop.f32.mrb[22].mxu1  ;;  %v596_v57 = vpop.f32.mrb[23].mxu0  ;;  %v986_v62 = vadd.f32 %v2425_v34, %v985_v53 }
 0x18b   : > { %v997_v59 = vadd.f32 %v1862_v56, %v2425_v34  ;;  %v1590_v60 = vpack.c.bf16 %v596_v57, %v593_v52  ;;  %v988_v61 = vpop.f32.mrb[23].mxu1 }
 0x18c   : > { %1707 = vst [vmem:[%s2431_s15 + $0x58] sm:$0xff] %v1595_v55   ;;  %v989_v63 = vadd.f32 %v2425_v34, %v988_v61 }
 0x18d   : > { %v1675_v0 = vpack.c.bf16 %v997_v59, %v994_v58  ;;  %1706 = vst [vmem:[%s2431_s15 + $0x50] sm:$0xff] %v1590_v60  }
 0x18e   : > { %v1670_v1 = vpack.c.bf16 %v989_v63, %v986_v62 }
 0x18f   : > { %1722 = vst [vmem:[%s2437_s16 + $0x58] sm:$0xff] %v1675_v0   ;;  %v1817_v2 = vpop.f32.mrb[24].mxu0 }
 0x190   : > { %1721 = vst [vmem:[%s2437_s16 + $0x50] sm:$0xff] %v1670_v1   ;;  %v1865_v3 = vpop.f32.mrb[24].mxu1  ;;  %v609_v4 = vpop.f32.mrb[25].mxu0 }
 0x191   : > { %v1001_v5 = vpop.f32.mrb[25].mxu1  ;;  %v1818_v6 = vpop.f32.mrb[26].mxu0  ;;  %v1010_v10 = vadd.f32 %v1865_v3, %v2425_v34 }
 0x192   : > { %v1605_v7 = vpack.c.bf16 %v1818_v6, %v1817_v2  ;;  %v1866_v8 = vpop.f32.mrb[26].mxu1  ;;  %v612_v9 = vpop.f32.mrb[27].mxu0  ;;  %v1002_v14 = vadd.f32 %v2425_v34, %v1001_v5 }
 0x193   : > { %v1013_v11 = vadd.f32 %v1866_v8, %v2425_v34  ;;  %v1600_v12 = vpack.c.bf16 %v612_v9, %v609_v4  ;;  %v1004_v13 = vpop.f32.mrb[27].mxu1 }
 0x194   : > { %1709 = vst [vmem:[%s2431_s15 + $0x68] sm:$0xff] %v1605_v7   ;;  %v1005_v15 = vadd.f32 %v2425_v34, %v1004_v13 }
 0x195   : > { %v1685_v16 = vpack.c.bf16 %v1013_v11, %v1010_v10  ;;  %1708 = vst [vmem:[%s2431_s15 + $0x60] sm:$0xff] %v1600_v12  }
 0x196   : > { %v1680_v17 = vpack.c.bf16 %v1005_v15, %v1002_v14 }
 0x197   : > { %1724 = vst [vmem:[%s2437_s16 + $0x68] sm:$0xff] %v1685_v16   ;;  %v1821_v18 = vpop.f32.mrb[28].mxu0 }
 0x198   : > { %1723 = vst [vmem:[%s2437_s16 + $0x60] sm:$0xff] %v1680_v17   ;;  %v1869_v19 = vpop.f32.mrb[28].mxu1  ;;  %v625_v20 = vpop.f32.mrb[29].mxu0 }
 0x199   : > { %v1017_v21 = vpop.f32.mrb[29].mxu1  ;;  %v1822_v22 = vpop.f32.mrb[30].mxu0  ;;  %v1026_v26 = vadd.f32 %v1869_v19, %v2425_v34 }
 0x19a   : > { %v1615_v23 = vpack.c.bf16 %v1822_v22, %v1821_v18  ;;  %v1870_v24 = vpop.f32.mrb[30].mxu1  ;;  %v628_v25 = vpop.f32.mrb[31].mxu0  ;;  %v1018_v30 = vadd.f32 %v2425_v34, %v1017_v21 }
 0x19b   : > { %v1029_v27 = vadd.f32 %v1870_v24, %v2425_v34  ;;  %v1610_v28 = vpack.c.bf16 %v628_v25, %v625_v20  ;;  %v1020_v29 = vpop.f32.mrb[31].mxu1 }
 0x19c   : > { %1711 = vst [vmem:[%s2431_s15 + $0x78] sm:$0xff] %v1615_v23   ;;  %v1021_v31 = vadd.f32 %v2425_v34, %v1020_v29 }
 0x19d   : > { %v1695_v32 = vpack.c.bf16 %v1029_v27, %v1026_v26  ;;  %1710 = vst [vmem:[%s2431_s15 + $0x70] sm:$0xff] %v1610_v28  }
 0x19e   : > { %v1690_v33 = vpack.c.bf16 %v1021_v31, %v1018_v30 }
 0x19f   : > { %2078 = shalt.err (!%p2075_p1)
}
 0x1a0   : > { %s2079_s15 = scalar_lea.hbm %s2494_s30, 2048  ;;  %s2083_s9 = scalar_lea.hbm %s2590_s4, 4096 }
 0x1a1   : > { %p2080_p13 = scmp.ne.s32.totalorder %s2494_s30, %s2079_s15  ;;  %p2084_p4 = scmp.lt.u32.totalorder %s2494_s30, %s2590_s4 }
 0x1a2   : > { %p2085_p5 = scmp.lt.u32.totalorder %s2083_s9, %s2079_s15  ;;  %p2087_p11 = scmp.lt.u32.totalorder %s2079_s15, %s2494_s30 }
 0x1a3   : > { %p2081_p6 = pnand %p2080_p13, %p2605_p0 }
 0x1a4   : > { %p2086_p8 = por %p2085_p5, %p2084_p4 }
 0x1a5   : > { %p2082_p10 = pneg %p2081_p6 }
 0x1a6   : > { %p2088_p2 = por %p2087_p11, %p2086_p8 }
 0x1a8   : > { %p2089_p3 = pnand %p2088_p2, %p2082_p10 }
 0x1aa   : > { %2092 = shalt.err (!%p2089_p3)
}
 0x1ab   : > { %s2175_s12 = smov 64   ;;  %s2176_s8 = smov 4   ;;  %1726 = vst [vmem:[%s2437_s16 + $0x78] sm:$0xff] %v1695_v32   ;;  %1725 = vst [vmem:[%s2437_s16 + $0x70] sm:$0xff] %v1690_v33  }
 0x1ac   : > { %1881 = dma.vmem_to_hbm [thread:$0]  (%p2605_p0), %s2496_s28, 2048, %s2494_s30, %s1193_s6, %s2175_s12, %s2175_s12, %s2176_s8  }
 0x1ad   : > { %s1198_s24 = scalar_lea.sflag [#allocation10], %s2389_s14  ;;  %s2093_s26 = scalar_lea.vmem %s2510_s22, 2048 }
 0x1ae   : > { %p2094_p7 = scmp.ne.s32.totalorder %s2510_s22, %s2093_s26  ;;  %s2177_s15 = smov [#allocation9]  }
 0x1af   : > { %s2097_s10 = sshll.u32 %s2177_s15, 4  ;;  %s2098_s10 = int_to_ptr.vmem [resolvable:$false] %s2097_s10 }
 0x1b0   : > { %p2095_p9 = pnand %p2094_p7, %p2605_p0  ;;  %s2099_s13 = scalar_lea.vmem %s2098_s10, 4096 }
 0x1b1   : > { %p2100_p1 = scmp.lt.s32.totalorder %s2510_s22, %s2098_s10  ;;  %p2101_p13 = scmp.lt.s32.totalorder %s2099_s13, %s2093_s26 }
 0x1b2   : > { %p2096_p12 = pneg %p2095_p9 }
 0x1b3   : > { %p2102_p6 = por %p2101_p13, %p2100_p1 }
 0x1b5   : > { %p2103_p10 = pnand %p2102_p6, %p2096_p12 }
 0x1b7   : > { %2106 = shalt.err (!%p2103_p10)
}
 0x1b8   : > { %s2107_s16 = scalar_lea.hbm %s2508_s7, 2048  ;;  %s2111_s6 = scalar_lea.hbm %s2591_s5, 4096 }
 0x1b9   : > { %p2108_p4 = scmp.ne.s32.totalorder %s2508_s7, %s2107_s16  ;;  %p2112_p11 = scmp.lt.u32.totalorder %s2508_s7, %s2591_s5 }
 0x1ba   : > { %p2113_p2 = scmp.lt.u32.totalorder %s2111_s6, %s2107_s16  ;;  %p2115_p7 = scmp.lt.u32.totalorder %s2107_s16, %s2508_s7 }
 0x1bb   : > { %p2109_p5 = pnand %p2108_p4, %p2605_p0 }
 0x1bc   : > { %p2114_p3 = por %p2113_p2, %p2112_p11 }
 0x1bd   : > { %p2110_p8 = pneg %p2109_p5 }
 0x1be   : > { %p2116_p9 = por %p2115_p7, %p2114_p3 }
 0x1c0   : > { %p2117_p12 = pnand %p2116_p9, %p2110_p8 }
 0x1c2   : > { %2120 = shalt.err (!%p2117_p12)
}
 0x1c3   : > { %1882 = dma.vmem_to_hbm [thread:$0]  (%p2605_p0), %s2510_s22, 2048, %s2508_s7, %s1198_s24, %s2175_s12, %s2175_s12, %s2176_s8  }
 0x1c4 PF: > { %s1242_s17 = sand.u32 1, %s2155_s18   ;;  %p2606_p1 = scmp.ne.s32.totalorder %s2596_s25, 0 }
 0x1c5   : > { %p2607_p13 = scmp.ge.s32.totalorder %s2167_s21, 2  ;;  %s1243_s26 = scalar_lea.sflag [#allocation4], %s1242_s17 }
 0x1c7   : > { %p1897_p6 = pnand %p2607_p13, %p2606_p1 }
 0x1c9   : > { %2146 = dma.done.wait (!%p1897_p6), %s1243_s26, 2048  }
 0x1ca   : > { %2148 = vsyncadd (!%p1897_p6), %s1243_s26, 4294965248  ;;  %s1252_s23 = scalar_lea.sflag [#allocation10], %s1242_s17 }
 0x1cb   : > { %2150 = dma.done.wait (!%p1897_p6), %s1252_s23, 2048  }
 0x1cc   : > { %2152 = vsyncadd (!%p1897_p6), %s1252_s23, 4294965248  ;;  %p23_p0 = scmp.ge.s32.totalorder %s2324_s29, 4   ;;  %s2608_s18 = smov %s2159_s19 }
 0x1cd   : > { %s2609_s19 = smov %s2163_s20  ;;  %s2610_s20 = smov %s2340_s27 }
 0x1ce   : > { %s2611_s21 = smov %s2324_s29  ;;  %25 = sbr.rel (!%p23_p0) target bundleno = 8 (0x8), region = 106 }
 0x1d5   :  { %1257 = vsyncpa [#allocation3], 1 }
 0x1d6   :  { %1259 = vsyncpa [#allocation3 + $0x1], 1 }
 0x1d7   :  { %1260 = vsyncpa [#allocation6], 1 }
 0x1d8   :  { %1261 = vsyncpa [#allocation4], 1 }
 0x1d9   :  { %1263 = vsyncpa [#allocation4 + $0x1], 1 }
 0x1da   :  { %1264 = vsyncpa [#allocation10], 1 }
 0x1db   :  { %1266 = vsyncpa [#allocation10 + $0x1], 1 }

</bundles_post_ra>
